<compile_context>
chip_gen: v7x
topology: tpu7x:2x2x1
jax: 0.10.0
libtpu: 0.0.40
codegen_flags: <defaults>
</compile_context>

<pallas_src>
import math

import jax
import jax.numpy as jnp
from jax.experimental import pallas as pl
from jax.experimental.pallas import tpu as pltpu


def _round_up(x, m):
    return ((x + m - 1) // m) * m


def _make_kernel(heads, num_buckets, max_distance, ti, tj, sub, cj):
    half = num_buckets // 2
    max_exact = half // 2
    # Folded constants: val_large = max_exact + trunc(log(na) * C1 + C0)
    c1 = (half - max_exact) / math.log(max_distance / max_exact)
    c0 = -math.log(float(max_exact)) * c1
    n_rstrips = ti // sub
    n_cstrips = tj // cj

    def kernel(emb_ref, o_ref):
        # emb_ref: SMEM (num_buckets * heads,) f32, row-major [bucket, head]
        # o_ref  : VMEM (heads, ti, tj) f32 output tile
        i0 = pl.program_id(0) * ti
        j0 = pl.program_id(1) * tj
        row_iota = jax.lax.broadcasted_iota(jnp.int32, (sub, cj), 0)
        col_iota = jax.lax.broadcasted_iota(jnp.int32, (sub, cj), 1)

        def row_body(s, carry):
            r = pl.multiple_of(s * sub, sub)

            def col_body(t, carry2):
                q = pl.multiple_of(t * cj, cj)
                ii = row_iota + (i0 + r)          # query positions
                jj = col_iota + (j0 + q)          # key positions

                # _relative_position_bucket with npos = -(j - i) = i - j
                npos = ii - jj
                offset = jnp.where(npos < 0, half, 0)
                na = jnp.abs(npos)
                # clamp the (discarded) na == 0 lane so the log stays finite
                naf = jnp.maximum(na.astype(jnp.float32), 1.0)
                vl = max_exact + (jnp.log(naf) * c1 + c0).astype(jnp.int32)  # trunc, like .long()
                vl = jnp.minimum(vl, half - 1)
                bucket = offset + jnp.where(na < max_exact, na, vl)  # int32 in [0, num_buckets)

                # Only the buckets actually present in this chunk need a select pass;
                # bucket depends only on (i - j), so away from the diagonal this range
                # is 1-2 buckets wide.  (f32 reduce: values <= 31 are exact.)
                bucket_f = bucket.astype(jnp.float32)
                b_lo = jnp.min(bucket_f).astype(jnp.int32)
                b_hi = jnp.max(bucket_f).astype(jnp.int32)

                def bucket_body(b, accs):
                    mask = bucket == b            # one compare, shared by all heads
                    return tuple(
                        jnp.where(mask, emb_ref[b * heads + h], accs[h])  # overwrite-select
                        for h in range(heads))

                # Every element hits exactly one bucket in [b_lo, b_hi], so the
                # overwrite chain fully defines the result; the zero init is never
                # visible in the output.
                init = tuple(jnp.zeros((sub, cj), jnp.float32) for _ in range(heads))
                accs = jax.lax.fori_loop(b_lo, b_hi + 1, bucket_body, init)

                for h in range(heads):
                    o_ref[h, pl.ds(r, sub), pl.ds(q, cj)] = accs[h]
                return carry2

            jax.lax.fori_loop(0, n_cstrips, col_body, 0)
            return carry

        jax.lax.fori_loop(0, n_rstrips, row_body, 0)

    return kernel


def relative_position_bias(emb_weight, n, *, num_buckets=32, max_distance=128):
    """JAX/Pallas equivalent of RelativePositionBias.forward(n).

    emb_weight: (num_buckets, heads) float32 (the nn.Embedding weight).
    Returns (heads, n, n) float32.
    """
    nb_w, heads = emb_weight.shape
    assert nb_w == num_buckets

    # Lane-dense output tiles: tj a multiple of 128, ti a multiple of 8, both capped
    # at 512.  A (heads=8, 512, 512) f32 block is 8 MiB -> 16 MiB double-buffered,
    # safe inside v7x's 64 MiB VMEM and large enough to amortize grid-step overhead
    # on v5e/v6e.
    tj = min(512, _round_up(n, 128))
    ti = min(512, _round_up(n, 8))
    # Keep >= 2 grid steps so both TensorCores of a v7x chip get work.
    if pl.cdiv(n, ti) * pl.cdiv(n, tj) < 2 and n >= 16:
        ti = max(8, _round_up(pl.cdiv(n, 2), 8))
    sub = 8                                  # rows per inner strip (bounds vreg live ranges)
    cj = 256 if tj % 256 == 0 else 128       # columns per inner chunk (divides tj)

    kernel = _make_kernel(heads, num_buckets, max_distance, ti, tj, sub, cj)
    emb_flat = emb_weight.reshape(-1).astype(jnp.float32)   # [bucket, head] row-major

    return pl.pallas_call(
        kernel,
        out_shape=jax.ShapeDtypeStruct((heads, n, n), jnp.float32),
        grid_spec=pltpu.PrefetchScalarGridSpec(
            num_scalar_prefetch=0,
            grid=(pl.cdiv(n, ti), pl.cdiv(n, tj)),
            in_specs=[
                # tiny table -> SMEM, unblocked: fetched once, resident, scalar reads
                pl.BlockSpec(memory_space=pltpu.MemorySpace.SMEM),
            ],
            out_specs=pl.BlockSpec((heads, ti, tj), lambda i, j: (0, i, j)),
        ),
        compiler_params=pltpu.CompilerParams(
            dimension_semantics=("parallel", "parallel"),
            # worst-case double-buffered output block is 16 MiB; 32 MiB is safe on
            # v5e/v6e (128 MiB physical) and on v7x (64 MiB physical).
            vmem_limit_bytes=32 * 1024 * 1024,
        ),
    )(emb_flat)


def _reference_bias(emb, n, num_buckets, max_distance, trunc_eps=0.0):
    """Pure-JAX mirror of RelativePositionBias.forward.

    trunc_eps probes the float->int truncation boundary: the bucket formula
    truncates a float32 log expression, and at relative distances that are exact
    powers (16/32/64 with default params) the pre-trunc value is exactly an
    integer, so the truncated bucket is rounding-implementation dependent
    (PyTorch has the same ambiguity).  trunc_eps=0 reproduces the module literally.
    """
    half = num_buckets // 2
    me = half // 2
    q = jnp.arange(n, dtype=jnp.int32)[:, None]
    k = jnp.arange(n, dtype=jnp.int32)[None, :]
    npos = q - k                                    # = -(k - q)
    off = jnp.where(npos < 0, half, 0)
    na = jnp.abs(npos)
    naf = jnp.maximum(na.astype(jnp.float32), 1.0)
    v = jnp.log(naf / me) / math.log(max_distance / me) * (half - me)
    vl = me + (v + trunc_eps).astype(jnp.int32)
    vl = jnp.minimum(vl, half - 1)
    bucket = off + jnp.where(na < me, na, vl)
    vals = emb[bucket]                              # (n, n, heads) gather
    return jnp.transpose(vals, (2, 0, 1))           # (heads, n, n)


if __name__ == "__main__":
    heads, num_buckets, max_distance = 8, 32, 128   # module defaults
    n = 128                                         # sequence length

    key = jax.random.PRNGKey(0)
    # nn.Embedding default init: N(0, 1)
    emb_weight = jax.random.normal(key, (num_buckets, heads), dtype=jnp.float32)

    out = relative_position_bias(
        emb_weight, n, num_buckets=num_buckets, max_distance=max_distance)
    out = jax.block_until_ready(out)
    assert out.shape == (heads, n, n)

    # Boundary-tolerant reference check (see _reference_bias docstring): accept
    # either side of the exact trunc boundaries, exact match everywhere else.
    ref_lo = _reference_bias(emb_weight, n, num_buckets, max_distance, trunc_eps=-1e-5)
    ref_hi = _reference_bias(emb_weight, n, num_buckets, max_distance, trunc_eps=+1e-5)
    err = jnp.minimum(jnp.abs(out - ref_lo), jnp.abs(out - ref_hi))
    max_err = float(jnp.max(err))
    assert max_err < 1e-6, f"mismatch vs reference: max abs err = {max_err}"

    print("KERNEL_OK")
</pallas_src>

<mosaic_0001>
module attributes {stable_mosaic.version = 11 : i64} {
  func.func @kernel(%arg0: i32, %arg1: i32, %arg2: memref<256xf32, #tpu.memory_space<smem>>, %arg3: memref<8x64x128xf32, #tpu.memory_space<vmem>>) attributes {dimension_semantics = [#tpu.dimension_semantics<parallel>, #tpu.dimension_semantics<parallel>], iteration_bounds = array<i64: 2, 1>, scalar_prefetch = 0 : i64, scratch_operands = 0 : i64, tpu.core_type = #tpu.core_type<tc>, window_params = [{transform_indices = @transform_0, window_bounds = array<i64: 256>}, {transform_indices = @transform_1, window_bounds = array<i64: 8, 64, 128>}]} {
    %c64_i32 = arith.constant 64 : i32
    %0 = arith.muli %arg0, %c64_i32 : i32
    %c128_i32 = arith.constant 128 : i32
    %1 = arith.muli %arg1, %c128_i32 : i32
    %2 = tpu.iota {dimensions = array<i32: 0>} : vector<8x128xi32>
    %3 = tpu.iota {dimensions = array<i32: 1>} : vector<8x128xi32>
    %c0_i32 = arith.constant 0 : i32
    %c8_i32 = arith.constant 8 : i32
    %4 = arith.addi %c0_i32, %c8_i32 : i32
    %c1_i32 = arith.constant 1 : i32
    scf.for %arg4 = %c0_i32 to %4 step %c1_i32  : i32 {
      %c8_i32_1 = arith.constant 8 : i32
      %5 = arith.muli %arg4, %c8_i32_1 : i32
      %6 = tpu.assume_multiple %5, 8 : i32
      %c0_i32_2 = arith.constant 0 : i32
      %c128_i32_3 = arith.constant 128 : i32
      %7 = arith.muli %c0_i32_2, %c128_i32_3 : i32
      %8 = tpu.assume_multiple %7, 128 : i32
      %9 = arith.addi %0, %6 : i32
      %10 = vector.broadcast %9 : i32 to vector<8x128xi32>
      %11 = arith.addi %2, %10 : vector<8x128xi32>
      %12 = arith.addi %1, %8 : i32
      %13 = vector.broadcast %12 : i32 to vector<8x128xi32>
      %14 = arith.addi %3, %13 : vector<8x128xi32>
      %15 = arith.subi %11, %14 : vector<8x128xi32>
      %c0_i32_4 = arith.constant 0 : i32
      %16 = vector.broadcast %c0_i32_4 : i32 to vector<8x128xi32>
      %17 = arith.cmpi slt, %15, %16 : vector<8x128xi32>
      %c16_i32 = arith.constant 16 : i32
      %c0_i32_5 = arith.constant 0 : i32
      %18 = vector.broadcast %c16_i32 : i32 to vector<8x128xi32>
      %19 = vector.broadcast %c0_i32_5 : i32 to vector<8x128xi32>
      %20 = arith.select %17, %18, %19 : vector<8x128xi1>, vector<8x128xi32>
      %21 = math.absi %15 : vector<8x128xi32>
      %22 = arith.sitofp %21 : vector<8x128xi32> to vector<8x128xf32>
      %cst = arith.constant 1.000000e+00 : f32
      %23 = vector.broadcast %cst : f32 to vector<8x128xf32>
      %24 = arith.maximumf %22, %23 : vector<8x128xf32>
      %25 = math.log %24 : vector<8x128xf32>
      %cst_6 = arith.constant 2.885390e+00 : f32
      %26 = vector.broadcast %cst_6 : f32 to vector<8x128xf32>
      %27 = arith.mulf %25, %26 : vector<8x128xf32>
      %cst_7 = arith.constant -6.000000e+00 : f32
      %28 = vector.broadcast %cst_7 : f32 to vector<8x128xf32>
      %29 = arith.addf %27, %28 : vector<8x128xf32>
      %30 = arith.fptosi %29 : vector<8x128xf32> to vector<8x128xi32>
      %c8_i32_8 = arith.constant 8 : i32
      %31 = vector.broadcast %c8_i32_8 : i32 to vector<8x128xi32>
      %32 = arith.addi %31, %30 : vector<8x128xi32>
      %c15_i32 = arith.constant 15 : i32
      %33 = vector.broadcast %c15_i32 : i32 to vector<8x128xi32>
      %34 = arith.minsi %32, %33 : vector<8x128xi32>
      %c8_i32_9 = arith.constant 8 : i32
      %35 = vector.broadcast %c8_i32_9 : i32 to vector<8x128xi32>
      %36 = arith.cmpi slt, %21, %35 : vector<8x128xi32>
      %37 = arith.select %36, %21, %34 : vector<8x128xi1>, vector<8x128xi32>
      %38 = arith.addi %20, %37 : vector<8x128xi32>
      %39 = arith.sitofp %38 : vector<8x128xi32> to vector<8x128xf32>
      %40 = vector.shape_cast %39 : vector<8x128xf32> to vector<1x8x128xf32>
      %cst_10 = arith.constant dense<0x7F800000> : vector<1xf32>
      %41 = vector.multi_reduction <minimumf>, %40, %cst_10 [1, 2] : vector<1x8x128xf32> to vector<1xf32>
      %42 = vector.shape_cast %41 : vector<1xf32> to vector<1x1x1xf32>
      %43 = vector.extract %42[0, 0, 0] : f32 from vector<1x1x1xf32>
      %44 = arith.fptosi %43 : f32 to i32
      %45 = vector.shape_cast %39 : vector<8x128xf32> to vector<1x8x128xf32>
      %cst_11 = arith.constant dense<0xFF800000> : vector<1xf32>
      %46 = vector.multi_reduction <maximumf>, %45, %cst_11 [1, 2] : vector<1x8x128xf32> to vector<1xf32>
      %47 = vector.shape_cast %46 : vector<1xf32> to vector<1x1x1xf32>
      %48 = vector.extract %47[0, 0, 0] : f32 from vector<1x1x1xf32>
      %49 = arith.fptosi %48 : f32 to i32
      %cst_12 = arith.constant 0.000000e+00 : f32
      %50 = vector.broadcast %cst_12 : f32 to vector<8x128xf32>
      %cst_13 = arith.constant 0.000000e+00 : f32
      %51 = vector.broadcast %cst_13 : f32 to vector<8x128xf32>
      %cst_14 = arith.constant 0.000000e+00 : f32
      %52 = vector.broadcast %cst_14 : f32 to vector<8x128xf32>
      %cst_15 = arith.constant 0.000000e+00 : f32
      %53 = vector.broadcast %cst_15 : f32 to vector<8x128xf32>
      %cst_16 = arith.constant 0.000000e+00 : f32
      %54 = vector.broadcast %cst_16 : f32 to vector<8x128xf32>
      %cst_17 = arith.constant 0.000000e+00 : f32
      %55 = vector.broadcast %cst_17 : f32 to vector<8x128xf32>
      %cst_18 = arith.constant 0.000000e+00 : f32
      %56 = vector.broadcast %cst_18 : f32 to vector<8x128xf32>
      %cst_19 = arith.constant 0.000000e+00 : f32
      %57 = vector.broadcast %cst_19 : f32 to vector<8x128xf32>
      %c1_i32_20 = arith.constant 1 : i32
      %58 = arith.addi %49, %c1_i32_20 : i32
      %59 = arith.subi %58, %44 : i32
      %60 = arith.addi %44, %59 : i32
      %c1_i32_21 = arith.constant 1 : i32
      %61:8 = scf.for %arg5 = %44 to %60 step %c1_i32_21 iter_args(%arg6 = %50, %arg7 = %51, %arg8 = %52, %arg9 = %53, %arg10 = %54, %arg11 = %55, %arg12 = %56, %arg13 = %57) -> (vector<8x128xf32>, vector<8x128xf32>, vector<8x128xf32>, vector<8x128xf32>, vector<8x128xf32>, vector<8x128xf32>, vector<8x128xf32>, vector<8x128xf32>)  : i32 {
        %102 = vector.broadcast %arg5 : i32 to vector<8x128xi32>
        %103 = arith.cmpi eq, %38, %102 : vector<8x128xi32>
        %c8_i32_23 = arith.constant 8 : i32
        %104 = arith.muli %arg5, %c8_i32_23 : i32
        %c0_i32_24 = arith.constant 0 : i32
        %105 = arith.addi %104, %c0_i32_24 : i32
        %106 = arith.index_cast %105 : i32 to index
        %107 = memref.load %arg2[%106] : memref<256xf32, #tpu.memory_space<smem>>
        %108 = vector.broadcast %107 : f32 to vector<8x128xf32>
        %109 = arith.select %103, %108, %arg6 : vector<8x128xi1>, vector<8x128xf32>
        %c8_i32_25 = arith.constant 8 : i32
        %110 = arith.muli %arg5, %c8_i32_25 : i32
        %c1_i32_26 = arith.constant 1 : i32
        %111 = arith.addi %110, %c1_i32_26 : i32
        %112 = arith.index_cast %111 : i32 to index
        %113 = memref.load %arg2[%112] : memref<256xf32, #tpu.memory_space<smem>>
        %114 = vector.broadcast %113 : f32 to vector<8x128xf32>
        %115 = arith.select %103, %114, %arg7 : vector<8x128xi1>, vector<8x128xf32>
        %c8_i32_27 = arith.constant 8 : i32
        %116 = arith.muli %arg5, %c8_i32_27 : i32
        %c2_i32 = arith.constant 2 : i32
        %117 = arith.addi %116, %c2_i32 : i32
        %118 = arith.index_cast %117 : i32 to index
        %119 = memref.load %arg2[%118] : memref<256xf32, #tpu.memory_space<smem>>
        %120 = vector.broadcast %119 : f32 to vector<8x128xf32>
        %121 = arith.select %103, %120, %arg8 : vector<8x128xi1>, vector<8x128xf32>
        %c8_i32_28 = arith.constant 8 : i32
        %122 = arith.muli %arg5, %c8_i32_28 : i32
        %c3_i32 = arith.constant 3 : i32
        %123 = arith.addi %122, %c3_i32 : i32
        %124 = arith.index_cast %123 : i32 to index
        %125 = memref.load %arg2[%124] : memref<256xf32, #tpu.memory_space<smem>>
        %126 = vector.broadcast %125 : f32 to vector<8x128xf32>
        %127 = arith.select %103, %126, %arg9 : vector<8x128xi1>, vector<8x128xf32>
        %c8_i32_29 = arith.constant 8 : i32
        %128 = arith.muli %arg5, %c8_i32_29 : i32
        %c4_i32 = arith.constant 4 : i32
        %129 = arith.addi %128, %c4_i32 : i32
        %130 = arith.index_cast %129 : i32 to index
        %131 = memref.load %arg2[%130] : memref<256xf32, #tpu.memory_space<smem>>
        %132 = vector.broadcast %131 : f32 to vector<8x128xf32>
        %133 = arith.select %103, %132, %arg10 : vector<8x128xi1>, vector<8x128xf32>
        %c8_i32_30 = arith.constant 8 : i32
        %134 = arith.muli %arg5, %c8_i32_30 : i32
        %c5_i32 = arith.constant 5 : i32
        %135 = arith.addi %134, %c5_i32 : i32
        %136 = arith.index_cast %135 : i32 to index
        %137 = memref.load %arg2[%136] : memref<256xf32, #tpu.memory_space<smem>>
        %138 = vector.broadcast %137 : f32 to vector<8x128xf32>
        %139 = arith.select %103, %138, %arg11 : vector<8x128xi1>, vector<8x128xf32>
        %c8_i32_31 = arith.constant 8 : i32
        %140 = arith.muli %arg5, %c8_i32_31 : i32
        %c6_i32 = arith.constant 6 : i32
        %141 = arith.addi %140, %c6_i32 : i32
        %142 = arith.index_cast %141 : i32 to index
        %143 = memref.load %arg2[%142] : memref<256xf32, #tpu.memory_space<smem>>
        %144 = vector.broadcast %143 : f32 to vector<8x128xf32>
        %145 = arith.select %103, %144, %arg12 : vector<8x128xi1>, vector<8x128xf32>
        %c8_i32_32 = arith.constant 8 : i32
        %146 = arith.muli %arg5, %c8_i32_32 : i32
        %c7_i32 = arith.constant 7 : i32
        %147 = arith.addi %146, %c7_i32 : i32
        %148 = arith.index_cast %147 : i32 to index
        %149 = memref.load %arg2[%148] : memref<256xf32, #tpu.memory_space<smem>>
        %150 = vector.broadcast %149 : f32 to vector<8x128xf32>
        %151 = arith.select %103, %150, %arg13 : vector<8x128xi1>, vector<8x128xf32>
        scf.yield %109, %115, %121, %127, %133, %139, %145, %151 : vector<8x128xf32>, vector<8x128xf32>, vector<8x128xf32>, vector<8x128xf32>, vector<8x128xf32>, vector<8x128xf32>, vector<8x128xf32>, vector<8x128xf32>
      }
      %c0 = arith.constant 0 : index
      %62 = arith.index_cast %6 : i32 to index
      %63 = arith.index_cast %8 : i32 to index
      %64 = vector.load %arg3[%c0, %62, %63] : memref<8x64x128xf32, #tpu.memory_space<vmem>>, vector<1x8x128xf32>
      %65 = vector.shape_cast %64 : vector<1x8x128xf32> to vector<8x128xf32>
      %66 = vector.shape_cast %61#0 : vector<8x128xf32> to vector<1x8x128xf32>
      tpu.vector_store %arg3[%c0, %62, %63], %66 {strides = array<i32>} : memref<8x64x128xf32, #tpu.memory_space<vmem>>, vector<1x8x128xf32>,
      %c1 = arith.constant 1 : index
      %67 = arith.index_cast %6 : i32 to index
      %68 = arith.index_cast %8 : i32 to index
      %69 = vector.load %arg3[%c1, %67, %68] : memref<8x64x128xf32, #tpu.memory_space<vmem>>, vector<1x8x128xf32>
      %70 = vector.shape_cast %69 : vector<1x8x128xf32> to vector<8x128xf32>
      %71 = vector.shape_cast %61#1 : vector<8x128xf32> to vector<1x8x128xf32>
      tpu.vector_store %arg3[%c1, %67, %68], %71 {strides = array<i32>} : memref<8x64x128xf32, #tpu.memory_space<vmem>>, vector<1x8x128xf32>,
      %c2 = arith.constant 2 : index
      %72 = arith.index_cast %6 : i32 to index
      %73 = arith.index_cast %8 : i32 to index
      %74 = vector.load %arg3[%c2, %72, %73] : memref<8x64x128xf32, #tpu.memory_space<vmem>>, vector<1x8x128xf32>
      %75 = vector.shape_cast %74 : vector<1x8x128xf32> to vector<8x128xf32>
      %76 = vector.shape_cast %61#2 : vector<8x128xf32> to vector<1x8x128xf32>
      tpu.vector_store %arg3[%c2, %72, %73], %76 {strides = array<i32>} : memref<8x64x128xf32, #tpu.memory_space<vmem>>, vector<1x8x128xf32>,
      %c3 = arith.constant 3 : index
      %77 = arith.index_cast %6 : i32 to index
      %78 = arith.index_cast %8 : i32 to index
      %79 = vector.load %arg3[%c3, %77, %78] : memref<8x64x128xf32, #tpu.memory_space<vmem>>, vector<1x8x128xf32>
      %80 = vector.shape_cast %79 : vector<1x8x128xf32> to vector<8x128xf32>
      %81 = vector.shape_cast %61#3 : vector<8x128xf32> to vector<1x8x128xf32>
      tpu.vector_store %arg3[%c3, %77, %78], %81 {strides = array<i32>} : memref<8x64x128xf32, #tpu.memory_space<vmem>>, vector<1x8x128xf32>,
      %c4 = arith.constant 4 : index
      %82 = arith.index_cast %6 : i32 to index
      %83 = arith.index_cast %8 : i32 to index
      %84 = vector.load %arg3[%c4, %82, %83] : memref<8x64x128xf32, #tpu.memory_space<vmem>>, vector<1x8x128xf32>
      %85 = vector.shape_cast %84 : vector<1x8x128xf32> to vector<8x128xf32>
      %86 = vector.shape_cast %61#4 : vector<8x128xf32> to vector<1x8x128xf32>
      tpu.vector_store %arg3[%c4, %82, %83], %86 {strides = array<i32>} : memref<8x64x128xf32, #tpu.memory_space<vmem>>, vector<1x8x128xf32>,
      %c5 = arith.constant 5 : index
      %87 = arith.index_cast %6 : i32 to index
      %88 = arith.index_cast %8 : i32 to index
      %89 = vector.load %arg3[%c5, %87, %88] : memref<8x64x128xf32, #tpu.memory_space<vmem>>, vector<1x8x128xf32>
      %90 = vector.shape_cast %89 : vector<1x8x128xf32> to vector<8x128xf32>
      %91 = vector.shape_cast %61#5 : vector<8x128xf32> to vector<1x8x128xf32>
      tpu.vector_store %arg3[%c5, %87, %88], %91 {strides = array<i32>} : memref<8x64x128xf32, #tpu.memory_space<vmem>>, vector<1x8x128xf32>,
      %c6 = arith.constant 6 : index
      %92 = arith.index_cast %6 : i32 to index
      %93 = arith.index_cast %8 : i32 to index
      %94 = vector.load %arg3[%c6, %92, %93] : memref<8x64x128xf32, #tpu.memory_space<vmem>>, vector<1x8x128xf32>
      %95 = vector.shape_cast %94 : vector<1x8x128xf32> to vector<8x128xf32>
      %96 = vector.shape_cast %61#6 : vector<8x128xf32> to vector<1x8x128xf32>
      tpu.vector_store %arg3[%c6, %92, %93], %96 {strides = array<i32>} : memref<8x64x128xf32, #tpu.memory_space<vmem>>, vector<1x8x128xf32>,
      %c7 = arith.constant 7 : index
      %97 = arith.index_cast %6 : i32 to index
      %98 = arith.index_cast %8 : i32 to index
      %99 = vector.load %arg3[%c7, %97, %98] : memref<8x64x128xf32, #tpu.memory_space<vmem>>, vector<1x8x128xf32>
      %100 = vector.shape_cast %99 : vector<1x8x128xf32> to vector<8x128xf32>
      %101 = vector.shape_cast %61#7 : vector<8x128xf32> to vector<1x8x128xf32>
      tpu.vector_store %arg3[%c7, %97, %98], %101 {strides = array<i32>} : memref<8x64x128xf32, #tpu.memory_space<vmem>>, vector<1x8x128xf32>,
      %c1_i32_22 = arith.constant 1 : i32
    }
    %c8_i32_0 = arith.constant 8 : i32
    return
  }
  func.func @transform_0(%arg0: i32, %arg1: i32) -> i32 {
    %c0_i32 = arith.constant 0 : i32
    %c0_i32_0 = arith.constant 0 : i32
    return %c0_i32 : i32
  }
  func.func @transform_1(%arg0: i32, %arg1: i32) -> (i32, i32, i32) {
    %c0_i32 = arith.constant 0 : i32
    %c0_i32_0 = arith.constant 0 : i32
    return %c0_i32, %arg0, %arg1 : i32, i32, i32
  }
}

</mosaic_0001>

<bundles_post_ra>
// kernel: tpu_custom_call.1
= control target key start
LH: loop header
LB: loop body
LE: loop exit
PB: predicated region body
PF: predicated region fallthrough
CT: control target
= control target key end

     0   :  { %6 = vsyncpa [#allocation4], 0  ;;  %s1181_s0 = inlined_call_operand.hbm [shape: f32[256], index: 0, kind: input, shape index: {}]   ;;  %s1182_s1 = inlined_call_operand.hbm [shape: f32[8,128,128], index: 1, kind: output, shape index: {}]  }
   0x1   :  { %7 = vsyncpa [#allocation3], 0 }
   0x2   :  { %9 = vsyncpa [#allocation3 + $0x1], 0  ;;  %s929_s6 = smov 0   ;;  %s931_s7 = smov 0  }
   0x3   :  { %s933_s8 = smov 0   ;;  %s935_s9 = smov 0  }
   0x4   :  { %s937_s10 = smov 0   ;;  %s939_s11 = smov 0  }
   0x5 LB: > { %s426_s12 = sadd.s32 4294967295, %s837_s11   ;;  %s427_s13 = sadd.s32 4294967294, %s837_s11   ;;  %s837_s11 = sphi %s939_s11, %s15_s11   ;;  %s833_s10 = sphi %s937_s10, %s1211_s10   ;;  %s829_s9 = sphi %s935_s9, %s1210_s9   ;;  %s825_s8 = sphi %s933_s8, %s1209_s8   ;;  %s821_s7 = sphi %s931_s7, %s1208_s7   ;;  %s817_s6 = sphi %s929_s6, %s1207_s6  }
   0x6   : > { %s27_s14 = sadd.s32 1, %s833_s10  ;;  %s57_s15 = sadd.s32 1, %s825_s8 }
   0x7   : > { %p29_p0 = scmp.ge.s32.totalorder %s27_s14, 2  ;;  %p67_p1 = scmp.ne.s32.totalorder %s825_s8, %s821_s7 }
   0x8   : > { %p68_p2 = scmp.eq.s32.totalorder %s426_s12, 1  ;;  %p73_p3 = scmp.ne.s32.totalorder %s821_s7, %s817_s6 }
   0x9   : > { %s1213_s14 = smov (%p29_p0, %s27_s14), 0  ;;  %p74_p5 = scmp.eq.s32.totalorder %s427_s13, 1 }
   0xa   : > { %p969_p4 = por %p68_p2, %p67_p1  ;;  %s52_s17 = ssub.s32 %s833_s10, %s1213_s14 }
   0xb   : > { %p428_p6 = scmp.ge.s32.totalorder %s837_s11, 1  ;;  %p55_p7 = scmp.eq.s32.totalorder %s52_s17, 0 }
   0xc   : > { %p976_p8 = por %p74_p5, %p73_p3  ;;  %p81_p9 = scmp.lt.s32.totalorder %s837_s11, 3 }
   0xd   : > { %s982_s19 = scalar_select %p55_p7, %s825_s8, %s57_s15  }
   0xe   : > { %p984_p10 = pnand %p428_p6, %p81_p9  ;;  %p988_p11 = scmp.eq.s32.totalorder %s426_s12, 0 }
   0xf   : > { %s698_s24 = scalar_lea.hbm %s1181_s0, 32 }
  0x10   : > { %p485_p12 = pneg %p984_p10  ;;  %p699_p0 = scmp.ne.s32.totalorder %s1181_s0, %s698_s24 }
  0x11   : > { %p705_p5 = scmp.lt.u32.totalorder %s698_s24, %s1181_s0 }
  0x12   : > { %p486_p13 = pnand %p988_p11, %p485_p12 }
  0x14   : > { %p700_p1 = pneg %p486_p13 }
  0x16   : > { %p701_p2 = pnand %p700_p1, %p699_p0 }
  0x18   : > { %p702_p3 = pneg %p701_p2 }
  0x1a   : > { %p707_p6 = pnand %p705_p5, %p702_p3 }
  0x1c   : > { %710 = shalt.err (!%p707_p6)
}
  0x1d   : > { %s911_s29 = smov [#allocation2]   ;;  %105 = sbr.rel (%p984_p10) target bundleno = 348 (0x15c), region = 24 }
  0x1e   : > { %488 = dma.hbm_to_smem (!%p486_p13), %s1181_s0, 32, %s911_s29, [#allocation4]  }
  0x24   : > { %808 = dma.done.wait (%p988_p11), [#allocation4], 32  }
  0x25   : > { %810 = vsyncadd (%p988_p11), [#allocation4], 4294967264 }
  0x26   : > { %111 = sfence }
  0x27   : > { %s1183_s3 = sand.u32 1, %s821_s7   ;;  %v124_v0 = vlaneseq  ;;  %s1025_s13 = smov 0  }
  0x28   : > { %s1018_s5 = sshll.u32 %s1183_s3, 9 }
  0x29   : > { %v1020_v1 = vshrl.u32 %v124_v0, 7  ;;  %v1022_v2 = vand.u32 127, %v124_v0 }
  0x2a LB: >> { %s1184_s15 = sshll.u32 %s841_s13, 3  ;;  %s1189_s4 = sshll.u32 %s829_s9, 6  ;;  %v912_v17 = vmov 0   ;;  %v1043_v37 = vmov 0.0   ;;  %v1045_v38 = vmov 0.0   ;;  %v1047_v39 = vmov 0.0   ;;  %s841_s13 = sphi %s1025_s13, %s133_s13  }
  0x2b   : >> { %s135_s17 = sadd.s32 %s1184_s15, %s1189_s4  ;;  %v1049_v40 = vmov 0.0   ;;  %v1051_v41 = vmov 0.0   ;;  %v1053_v42 = vmov 0.0   ;;  %v1055_v43 = vmov 0.0  }
  0x2c   : >> { %v136_v3 = vstv %s135_s17  ;;  %v1057_v44 = vmov 0.0  }
  0x2d   : >> { %v137_v4 = vadd.s32 %v136_v3, %v1020_v1 }
  0x2f   : >> { %v141_v5 = vsub.s32 %v137_v4, %v1022_v2 }
  0x31   : >> { %v144_v6 = vsub.s32 0, %v141_v5  ;;  %vm142_vm0 = vcmp.lt.s32.totalorder %v141_v5, 0 }
  0x32   : >> { %v143_v18 = vsel %vm142_vm0, 16, %v912_v17 }
  0x33   : >> { %v435_v7 = vmin.u32 %v144_v6, %v141_v5 }
  0x35   : >> { %v146_v8 = vcvt.s32.f32 %v435_v7  ;;  %vm156_vm1 = vcmp.lt.s32.totalorder %v435_v7, 8 }
  0x37   : >> { %v147_v9 = vmax.f32 %v146_v8, 1.0 }
  0x39   : >> { %696 = vlog2.f32 %v147_v9 }
  0x43   : >> { %v697_v10 = vpop.eup %696 }
  0x44   : >> { %v149_v11 = vmul.f32 0.6931472, %v697_v10 }
  0x46   : >> { %v150_v12 = vmul.f32 2.88539, %v149_v11 }
  0x48   : >> { %v151_v13 = vadd.f32 -6.0, %v150_v12 }
  0x4a   : >> { %v457_v14 = vtrunc.f32 %v151_v13 }
  0x4c   : >> { %v458_v15 = vcvt.f32.s32 %v457_v14 }
  0x4e   : >> { %v153_v16 = vadd.s32 8, %v458_v15 }
  0x50   : >> { %vm154_vm2 = vcmp.lt.s32.totalorder %v153_v16, 15 }
  0x51   : >> { %v155_v19 = vsel %vm154_vm2, %v153_v16, 15 }
  0x52   : >> { %v157_v20 = vsel %vm156_vm1, %v435_v7, %v155_v19 }
  0x53   : >> { %v1037_v21 = vadd.s32 %v157_v20, %v143_v18 }
  0x55   : >> { %v159_v22 = vcvt.s32.f32 %v1037_v21 }
  0x57   : >> { %160 = vmin.xlane.f32.xlu0 %v159_v22 }
  0x5b   : >> { %170 = vmax.xlane.f32.xlu0 %v159_v22 }
  0xe4   : >> { %v161_v23 = vpop.xlane.xlu0 %160 }
  0xe5   : >> { %v162_v24 = vrot.slane %v161_v23, 4 }
  0xe7   : >> { %v163_v25 = vmin.f32 %v161_v23, %v162_v24 }
  0xe8   : >> { %v171_v26 = vpop.xlane.xlu0 %170 }
  0xe9   : >> { %v164_v27 = vrot.slane %v163_v25, 2  ;;  %v172_v28 = vrot.slane %v171_v26, 4 }
  0xeb   : >> { %v173_v29 = vmax.f32 %v171_v26, %v172_v28  ;;  %v165_v30 = vmin.f32 %v163_v25, %v164_v27 }
  0xed   : >> { %v174_v31 = vrot.slane %v173_v29, 2  ;;  %v166_v32 = vrot.slane %v165_v30, 1 }
  0xef   : >> { %v175_v33 = vmax.f32 %v173_v29, %v174_v31  ;;  %v167_v34 = vmin.f32 %v165_v30, %v166_v32 }
  0xf1   : >> { %459 = vpush %v167_v34  ;;  %v176_v35 = vrot.slane %v175_v33, 1 }
  0xf3   : >> { %v177_v36 = vmax.f32 %v175_v33, %v176_v35 }
  0xf5   : >> { %466 = vpush %v177_v36 }
 0x122   : >> { %s460_s20 = spop %459 }
 0x123   : >> { %p461_p7 = scmp.lt.s32.totalorder %s460_s20, 0  ;;  %s462_s21 = sceil.f32 %s460_s20 }
 0x124   : >> { %s463_s22 = sfloor.f32 %s460_s20 }
 0x125   : >> { %s1215_s21 = smov (!%p461_p7, %s462_s21), %s463_s22 }
 0x126   : >> { %s467_s23 = spop %466  ;;  %s465_s24 = scvt.f32.s32 %s1215_s21  }
 0x127   : >> { %p468_p9 = scmp.lt.s32.totalorder %s467_s23, 0  ;;  %s469_s25 = sceil.f32 %s467_s23 }
 0x128   : >> { %s470_s26 = sfloor.f32 %s467_s23 }
 0x129   : >> { %s1217_s25 = smov (!%p468_p9, %s469_s25), %s470_s26 }
 0x12a   : >> { %s472_s27 = scvt.f32.s32 %s1217_s25 }
 0x12c   : >> { %s1040_s28 = sadd.s32 1, %s472_s27 }
 0x12d   : >> { %p361_p10 = scmp.ge.s32.totalorder %s465_s24, %s1040_s28 }
 0x12e   : >> { %v1059_v45 = vmov (!%p361_p10), 0.0   ;;  %v1061_v46 = vmov (!%p361_p10), 0.0   ;;  %v1063_v47 = vmov (!%p361_p10), 0.0   ;;  %v855_v48 = vmov (!%p361_p10), 0.0  }
 0x12f   : >> { %370 = sbr.rel (%p361_p10) target bundleno = 327 (0x147), region = 82  ;;  %v859_v49 = vmov (!%p361_p10), 0.0   ;;  %v863_v50 = vmov (!%p361_p10), 0.0   ;;  %v867_v51 = vmov (!%p361_p10), 0.0   ;;  %v871_v52 = vmov (!%p361_p10), 0.0  }
 0x136 LB: >>> { %s436_s29 = sshll.u32 %s877_s24, 3  ;;  %v195_v53 = vstv %s877_s24  ;;  %s184_s24 = sadd.s32 1, %s877_s24   ;;  %s877_s24 = sphi %s465_s24, %s184_s24   ;;  %v873_v52 = vphi %v871_v52, %v872_v52   ;;  %v869_v51 = vphi %v867_v51, %v868_v51   ;;  %v865_v50 = vphi %v863_v50, %v864_v50   ;;  %v861_v49 = vphi %v859_v49, %v860_v49   ;;  %v857_v48 = vphi %v855_v48, %v856_v48   ;;  %v853_v47 = vphi %v1063_v47, %v1194_v47   ;;  %v849_v46 = vphi %v1061_v46, %v1193_v46   ;;  %v845_v45 = vphi %v1059_v45, %v1192_v45  }
 0x137   : >>> { %s198_s30 = sld [smem:[#allocation2 + %s436_s29]]  ;;  %s201_s2 = sadd.s32 1, %s436_s29  ;;  %vm1076_vm3 = vcmp.eq.s32.totalorder %v1037_v21, %v195_v53 }
 0x138   : >>> { %s202_s17 = sld [smem:[#allocation2 + %s201_s2]]  ;;  %s205_s20 = sadd.s32 2, %s436_s29 }
 0x139   : >>> { %s206_s21 = sld [smem:[#allocation2 + %s205_s20]]  ;;  %s209_s22 = sadd.s32 3, %s436_s29 }
 0x13a   : >>> { %s210_s23 = sld [smem:[#allocation2 + %s209_s22]]  ;;  %s213_s25 = sadd.s32 4, %s436_s29 }
 0x13b   : >>> { %s214_s26 = sld [smem:[#allocation2 + %s213_s25]]  ;;  %s217_s27 = sadd.s32 5, %s436_s29 }
 0x13c   : >>> { %s218_s4 = sld [smem:[#allocation2 + %s217_s27]]  ;;  %s221_s3 = sadd.s32 6, %s436_s29 }
 0x13d   : >>> { %v199_v55 = vstv %s198_s30  ;;  %s222_s12 = sld [smem:[#allocation2 + %s221_s3]]  ;;  %s225_s15 = sadd.s32 7, %s436_s29 }
 0x13e   : >>> { %v200_v56 = vsel %vm1076_vm3, %v199_v55, %v873_v52   ;;  %v203_v57 = vstv %s202_s17  ;;  %s226_s2 = sld [smem:[#allocation2 + %s225_s15]]  ;;  %p183_p11 = scmp.ge.s32.totalorder %s184_s24, %s1040_s28 }
 0x13f   : >>> { %v204_v58 = vsel %vm1076_vm3, %v203_v57, %v869_v51   ;;  %v207_v59 = vstv %s206_s21  ;;  %v872_v52 = vmov %v200_v56   ;;  %v1202_v44 = vmov (%p183_p11), %v200_v56 }
 0x140   : >>> { %v208_v60 = vsel %vm1076_vm3, %v207_v59, %v865_v50   ;;  %v211_v61 = vstv %s210_s23  ;;  %v868_v51 = vmov %v204_v58   ;;  %186 = sbr.rel (!%p183_p11) target bundleno = 310 (0x136), region = 88  ;;  %v1201_v43 = vmov (%p183_p11), %v204_v58 }
 0x141   : >>> { %v212_v62 = vsel %vm1076_vm3, %v211_v61, %v861_v49   ;;  %v215_v63 = vstv %s214_s26  ;;  %v864_v50 = vmov %v208_v60   ;;  %v1200_v42 = vmov (%p183_p11), %v208_v60 }
 0x142   : >>> { %v216_v0 = vsel %vm1076_vm3, %v215_v63, %v857_v48   ;;  %v219_v3 = vstv %s218_s4  ;;  %v860_v49 = vmov %v212_v62   ;;  %v1199_v41 = vmov (%p183_p11), %v212_v62 }
 0x143   : >>> { %v220_v4 = vsel %vm1076_vm3, %v219_v3, %v853_v47   ;;  %v223_v5 = vstv %s222_s12  ;;  %v856_v48 = vmov %v216_v0   ;;  %v1198_v40 = vmov (%p183_p11), %v216_v0 }
 0x144   : >>> { %v224_v6 = vsel %vm1076_vm3, %v223_v5, %v849_v46   ;;  %v227_v7 = vstv %s226_s2  ;;  %v1194_v47 = vmov %v220_v4  ;;  %v1197_v39 = vmov (%p183_p11), %v220_v4 }
 0x145   : >>> { %v228_v8 = vsel %vm1076_vm3, %v227_v7, %v845_v45   ;;  %v1193_v46 = vmov %v224_v6  ;;  %v1196_v38 = vmov (%p183_p11), %v224_v6 }
 0x146   : >>> { %v1192_v45 = vmov %v228_v8  ;;  %v1195_v37 = vmov (%p183_p11), %v228_v8 }
 0x147 PF: >> { %s1203_s3 = sshll.u32 %s841_s13, 3  ;;  %s1204_s4 = scalar_lea.vmem [#allocation5], %s1018_s5  ;;  %v909_v44 = vphi %v1057_v44, %v1202_v44   ;;  %v905_v43 = vphi %v1055_v43, %v1201_v43   ;;  %v901_v42 = vphi %v1053_v42, %v1200_v42   ;;  %v897_v41 = vphi %v1051_v41, %v1199_v41   ;;  %v893_v40 = vphi %v1049_v40, %v1198_v40   ;;  %v889_v39 = vphi %v1047_v39, %v1197_v39   ;;  %v885_v38 = vphi %v1045_v38, %v1196_v38   ;;  %v881_v37 = vphi %v1043_v37, %v1195_v37  }
 0x148   : >> { %s230_s12 = scalar_lea.vmem %s1204_s4, %s1203_s3 [#allocation5]  ;;  %s133_s13 = sadd.s32 1, %s841_s13  }
 0x149   : >> { %231 = vst [vmem:[%s230_s12] sm:$0xff] %v909_v44  ;;  %438 = vst [vmem:[%s230_s12 + $0x40] sm:$0xff] %v905_v43  ;;  %p130_p12 = scmp.ge.s32.totalorder %s133_s13, 8  }
 0x14a   : >> { %440 = vst [vmem:[%s230_s12 + $0x80] sm:$0xff] %v901_v42  ;;  %442 = vst [vmem:[%s230_s12 + $0xc0] sm:$0xff] %v897_v41  ;;  %s1205_s15 = sand.u32 (%p130_p12), 1, %s821_s7  }
 0x14b   : >> { %444 = vst [vmem:[%s230_s12 + $0x100] sm:$0xff] %v893_v40  ;;  %446 = vst [vmem:[%s230_s12 + $0x140] sm:$0xff] %v889_v39  ;;  %132 = sbr.rel (!%p130_p12) target bundleno = 42 (0x2a), region = 99  ;;  %s254_s24 = scalar_lea.sflag (%p130_p12), [#allocation3], %s1205_s15 }
 0x14c   : >> { %448 = vst [vmem:[%s230_s12 + $0x180] sm:$0xff] %v885_v38  ;;  %450 = vst [vmem:[%s230_s12 + $0x1c0] sm:$0xff] %v881_v37 }
 0x152   : > { %s456_s28 = sshll.u32 %s829_s9, 10  ;;  %s1206_s29 = scalar_lea.vmem [#allocation5], %s1018_s5 }
 0x153   : > { %s284_s30 = sshll.u32 %s1206_s29, 4  ;;  %s267_s13 = scalar_lea.hbm %s1182_s1, %s456_s28  ;;  %s285_s30 = int_to_ptr.vmem [resolvable:$true] %s284_s30 }
 0x154   : > { %s913_s21 = smov 1024   ;;  %s914_s22 = smov 2048  }
 0x155   : > { %477 = sst [smem:[#allocation7]] (%p969_p4), %s913_s21  ;;  %s915_s23 = smov 8  }
 0x156   : > { %478 = sst [smem:[#allocation7 + $0x1]] (%p969_p4), %s914_s22  ;;  %s916_s25 = smov 128  }
 0x157   : > { %479 = sst [smem:[#allocation7 + $0x2]] (%p969_p4), %s915_s23  ;;  %s917_s9 = smov [#allocation6]  }
 0x158   : > { %480 = sst [smem:[#allocation7 + $0x3]] (%p969_p4), %s916_s25  ;;  %s918_s5 = smov 0  }
 0x159   : > { %481 = sst [smem:[#allocation7 + $0x4]] (%p969_p4), %s916_s25 }
 0x15a   : > { %482 = sst [smem:[#allocation7 + $0x5]] (%p969_p4), %s915_s23 }
 0x15b   : > { %483 = dma.general (%p969_p4), %s285_s30, 8192, %s267_s13, %s254_s24, %s917_s9, [#allocation7], %s918_s5, 0  }
 0x15c PF: > { %p495_p13 = scmp.ge.s32.totalorder %s837_s11, 2  ;;  %s312_s26 = sand.u32 1, %s817_s6  }
 0x15d   : > { %s313_s27 = scalar_lea.sflag [#allocation3], %s312_s26 }
 0x15e   : > { %p490_p0 = pnand %p495_p13, %p976_p8 }
 0x160   : > { %812 = dma.done.wait (!%p490_p0), %s313_s27, 8192  }
 0x161   : > { %814 = vsyncadd (!%p490_p0), %s313_s27, 4294959104  ;;  %s15_s11 = sadd.s32 1, %s837_s11   ;;  %s1207_s6 = smov %s821_s7 }
 0x162   : > { %p12_p1 = scmp.ge.s32.totalorder %s15_s11, 4   ;;  %s1208_s7 = smov %s825_s8 }
 0x163   : > { %s1209_s8 = smov %s982_s19  ;;  %s1210_s9 = smov %s833_s10 }
 0x164   : > { %s1211_s10 = smov %s1213_s14  ;;  %14 = sbr.rel (!%p12_p1) target bundleno = 5 (0x5), region = 110 }
 0x16b   :  { %318 = vsyncpa [#allocation3], 1 }
 0x16c   :  { %320 = vsyncpa [#allocation3 + $0x1], 1 }
 0x16d   :  { %321 = vsyncpa [#allocation4], 1 }
 0x16e   :  { %323 = vsyncpa [#allocation4 + $0x1], 1 }

</bundles_post_ra>
